<compile_context>
chip_gen: v7x
topology: tpu7x:2x2x1
jax: 0.10.0
libtpu: 0.0.40
codegen_flags: <defaults>
</compile_context>

<pallas_src>
import jax
import jax.numpy as jnp
import numpy as np
from jax.experimental import pallas as pl
from jax.experimental.pallas import tpu as pltpu

_EPS = 1e-5

_CPARAMS = pltpu.CompilerParams(
    dimension_semantics=("parallel",),          # batch blocks -> both TCs on v7x
    vmem_limit_bytes=32 * 1024 * 1024)          # safe on v5e/v6e/v7x alike


def _pick_block(n, cap=4):
    """Largest divisor of n that keeps >= 2 grid steps and bounded vreg pressure."""
    target = min(cap, max(1, n // 2))
    for b in range(target, 0, -1):
        if n % b == 0:
            return b
    return 1


def _toeplitz_weight(w_hwio, W):
    """(3,3,Cin,Cout) HWIO -> (3, W*Cin, W*Cout) per-dy width-Toeplitz matrices.

    T[dy, wp*Cin+ci, w*Cout+co] = w[dy, wp-w+1, ci, co] for wp-w+1 in {0,1,2}, else 0.
    Zero padding along W is implicit (no rows exist for wp outside [0, W))."""
    kH, kW, Cin, Cout = w_hwio.shape
    wp = jnp.arange(W)[:, None, None]
    wo = jnp.arange(W)[None, :, None]
    dx = jnp.arange(kW)[None, None, :]
    sel = (wp == wo + dx - (kW // 2)).astype(w_hwio.dtype)        # (W, W, kW)
    T = jnp.einsum('pwd,ydio->ypiwo', sel, w_hwio)                # (kH, W, Cin, W, Cout)
    return T.reshape(kH, W * Cin, W * Cout)


def _make_conv_kernel(B, H, W, Cin, Cout, pre_bn_relu):
    """Multi-image block kernel: [folded BN + ReLU] -> halo-only zero pad (H) ->
    3x3 conv as 3 lane-dense MXU matmuls -> lane-dense output + partial BN stats."""
    Kl = W * Cin
    Nl = W * Cout

    def kernel(*refs):
        if pre_bn_relu:
            x_ref, scale_ref, shift_ref, w_ref, c_ref, stats_ref, pad_ref = refs
        else:
            x_ref, w_ref, c_ref, stats_ref, pad_ref = refs

        x = x_ref[...]                                   # (B, H, W*Cin) f32, lane dense
        if pre_bn_relu:
            # Previous BatchNorm folded into one per-(w,c) FMA, then ReLU.
            x = jnp.maximum(x * scale_ref[...] + shift_ref[...], 0.0)

        # H-halo zero padding in VMEM scratch: zero ONLY the two halo rows; the
        # interior is fully overwritten every step (scratch reuse is safe under
        # "parallel").  W padding is already folded into the Toeplitz weight.
        zrow = jnp.zeros((B, 1, Kl), jnp.float32)
        pad_ref[:, 0:1, :] = zrow
        pad_ref[:, H + 1:H + 2, :] = zrow
        pad_ref[:, 1:H + 1, :] = x

        # 3x3 conv = 3 MXU matmuls (one per kernel row dy), each
        # (B*H, W*Cin) @ (W*Cin, W*Cout), all operands and the result lane-dense.
        acc = jnp.dot(pad_ref[:, 0:H, :].reshape(B * H, Kl), w_ref[0],
                      preferred_element_type=jnp.float32)
        acc = acc + jnp.dot(x.reshape(B * H, Kl), w_ref[1],
                            preferred_element_type=jnp.float32)
        acc = acc + jnp.dot(pad_ref[:, 2:H + 2, :].reshape(B * H, Kl), w_ref[2],
                            preferred_element_type=jnp.float32)

        c_ref[...] = acc.reshape(B, H, Nl)               # lane-dense output store

        # Per-step partial BN statistics, kept lane-dense (per (w, c) sums);
        # the per-channel reduction over w and over grid steps happens in the wrapper.
        stats_ref[0, :, 0:Nl] = jnp.sum(acc, axis=0, keepdims=True)
        stats_ref[0, :, Nl:2 * Nl] = jnp.sum(acc * acc, axis=0, keepdims=True)

    return kernel


def _make_finalize_kernel(with_res):
    """Folded BN (+ residual) + ReLU on lane-dense (B, H, W*Cout) blocks."""

    def kernel(*refs):
        if with_res:
            c_ref, sc_ref, sh_ref, r_ref, o_ref = refs
        else:
            c_ref, sc_ref, sh_ref, o_ref = refs
        y = c_ref[...] * sc_ref[...] + sh_ref[...]       # (B,H,W*C) * (1,W*C) broadcast
        if with_res:
            y = y + r_ref[...]
        o_ref[...] = jnp.maximum(y, 0.0)

    return kernel


def _conv_stage(x, t_w, H, W, Cin, Cout, B, scale=None, shift=None):
    """One conv layer (+ optional fused folded-BN/ReLU on its input)."""
    N = x.shape[0]
    G = N // B
    pre = scale is not None
    Kl, Nl = W * Cin, W * Cout

    in_specs = [pl.BlockSpec((B, H, Kl), lambda n: (n, 0, 0))]
    args = [x]
    if pre:
        in_specs += [pl.BlockSpec((1, Kl), lambda n: (0, 0)),
                     pl.BlockSpec((1, Kl), lambda n: (0, 0))]
        args += [scale, shift]
    in_specs.append(pl.BlockSpec((3, Kl, Nl), lambda n: (0, 0, 0)))
    args.append(t_w)

    c, stats = pl.pallas_call(
        _make_conv_kernel(B, H, W, Cin, Cout, pre),
        grid=(G,),
        in_specs=in_specs,
        out_specs=(pl.BlockSpec((B, H, Nl), lambda n: (n, 0, 0)),
                   pl.BlockSpec((1, 1, 2 * Nl), lambda n: (n, 0, 0))),
        out_shape=(jax.ShapeDtypeStruct((N, H, Nl), jnp.float32),
                   jax.ShapeDtypeStruct((G, 1, 2 * Nl), jnp.float32)),
        scratch_shapes=[pltpu.VMEM((B, H + 2, Kl), jnp.float32)],   # H-halo pad tile
        compiler_params=_CPARAMS,
    )(*args)
    return c, stats


def _bn_fold(stats, gamma, beta, W, C, count):
    """Fold training-mode BatchNorm (biased batch variance) into scale/shift."""
    s = stats.reshape(-1, 2, W, C).sum(axis=(0, 2))      # (2, C): [sum, sum of squares]
    mean = s[0] / count
    var = s[1] / count - mean * mean
    scale = gamma * jax.lax.rsqrt(var + _EPS)
    shift = beta - mean * scale
    return scale, shift


def block_forward(x_nhwc, params):
    """Pallas forward of Block.  x_nhwc: (N, H, W, Cin) float32; weights HWIO."""
    w1, g1, b1, w2, g2, b2 = params
    N, H, W, Cin = x_nhwc.shape
    Cmid = w1.shape[-1]
    Cout = w2.shape[-1]
    count = float(N * H * W)

    B = _pick_block(N)                                   # >=2 grid steps when N >= 2
    t1 = _toeplitz_weight(w1, W)                         # (3, W*Cin,  W*Cmid)
    t2 = _toeplitz_weight(w2, W)                         # (3, W*Cmid, W*Cout)
    x_flat = x_nhwc.reshape(N, H, W * Cin)               # lane-dense activation view

    # ---- stage 1: conv1 + partial BN1 stats ----
    c1, stats1 = _conv_stage(x_flat, t1, H, W, Cin, Cmid, B)
    scale1, shift1 = _bn_fold(stats1, g1, b1, W, Cmid, count)

    # ---- stage 2: BN1 + ReLU fused into conv2, + partial BN2 stats ----
    c2, stats2 = _conv_stage(
        c1, t2, H, W, Cmid, Cout, B,
        scale=jnp.tile(scale1, W).reshape(1, W * Cmid),
        shift=jnp.tile(shift1, W).reshape(1, W * Cmid))
    scale2, shift2 = _bn_fold(stats2, g2, b2, W, Cout, count)

    # ---- stage 3: BN2 (+ residual) + ReLU, multi-image lane-dense blocks ----
    with_res = (Cin == Cout)                             # forward()'s shape check
    Nl = W * Cout
    sc2 = jnp.tile(scale2, W).reshape(1, Nl)
    sh2 = jnp.tile(shift2, W).reshape(1, Nl)

    in_specs = [pl.BlockSpec((B, H, Nl), lambda n: (n, 0, 0)),
                pl.BlockSpec((1, Nl), lambda n: (0, 0)),
                pl.BlockSpec((1, Nl), lambda n: (0, 0))]
    args = [c2, sc2, sh2]
    if with_res:
        in_specs.append(pl.BlockSpec((B, H, Nl), lambda n: (n, 0, 0)))
        args.append(x_flat)

    out = pl.pallas_call(
        _make_finalize_kernel(with_res),
        grid=(N // B,),
        in_specs=in_specs,
        out_specs=pl.BlockSpec((B, H, Nl), lambda n: (n, 0, 0)),
        out_shape=jax.ShapeDtypeStruct((N, H, Nl), jnp.float32),
        compiler_params=_CPARAMS,
    )(*args)
    return out.reshape(N, H, W, Cout)


def block_reference(x_nhwc, params):
    """Pure-JAX reference (same training-mode BN semantics as the kernel)."""
    w1, g1, b1, w2, g2, b2 = params

    def conv(x, w):
        return jax.lax.conv_general_dilated(
            x, w, window_strides=(1, 1), padding="SAME",
            dimension_numbers=("NHWC", "HWIO", "NHWC"))

    def bn(y, g, b):
        mean = jnp.mean(y, axis=(0, 1, 2), keepdims=True)
        var = jnp.mean((y - mean) ** 2, axis=(0, 1, 2), keepdims=True)
        return (y - mean) / jnp.sqrt(var + _EPS) * g + b

    y = jnp.maximum(bn(conv(x_nhwc, w1), g1, b1), 0.0)
    y = bn(conv(y, w2), g2, b2)
    if y.shape == x_nhwc.shape:
        y = y + x_nhwc
    return jnp.maximum(y, 0.0)


def _run_case(N, Cin, width, H, W):
    k = jax.random.split(jax.random.PRNGKey(0), 7)
    # PyTorch-layout parameters (NCHW input, OIHW weights), as in Block.__init__.
    x_nchw = jax.random.normal(k[0], (N, Cin, H, W), jnp.float32)
    w1_oihw = 0.1 * jax.random.normal(k[1], (width, Cin, 3, 3), jnp.float32)    # CNN1
    w2_oihw = 0.1 * jax.random.normal(k[2], (width, width, 3, 3), jnp.float32)  # CNN2
    g1 = 1.0 + 0.1 * jax.random.normal(k[3], (width,), jnp.float32)             # BN1.weight
    b1 = 0.1 * jax.random.normal(k[4], (width,), jnp.float32)                   # BN1.bias
    g2 = 1.0 + 0.1 * jax.random.normal(k[5], (width,), jnp.float32)             # BN2.weight
    b2 = 0.1 * jax.random.normal(k[6], (width,), jnp.float32)                   # BN2.bias

    # NCHW -> NHWC activations, OIHW -> HWIO weights for the TPU kernel layout.
    x_nhwc = jnp.transpose(x_nchw, (0, 2, 3, 1))
    w1 = jnp.transpose(w1_oihw, (2, 3, 1, 0))
    w2 = jnp.transpose(w2_oihw, (2, 3, 1, 0))
    params = (w1, g1, b1, w2, g2, b2)

    out = jax.block_until_ready(block_forward(x_nhwc, params))
    ref = jax.block_until_ready(block_reference(x_nhwc, params))
    np.testing.assert_allclose(np.asarray(out), np.asarray(ref),
                               rtol=1e-4, atol=1e-4)


if __name__ == "__main__":
    # Residual branch exercised (Cin == width); N=2 -> B=1, 2 grid steps.
    _run_case(N=2, Cin=16, width=16, H=16, W=16)
    # Non-residual branch; N=4 -> B=2 images per grid step, still 2 grid steps.
    _run_case(N=4, Cin=8, width=16, H=16, W=16)
    print("KERNEL_OK")
</pallas_src>

<mosaic_0001>
module attributes {stable_mosaic.version = 11 : i64} {
  func.func @kernel(%arg0: i32, %arg1: memref<1x16x256xf32, #tpu.memory_space<vmem>>, %arg2: memref<3x256x256xf32, #tpu.memory_space<vmem>>, %arg3: memref<1x16x256xf32, #tpu.memory_space<vmem>>, %arg4: memref<1x1x512xf32, #tpu.memory_space<vmem>>, %arg5: memref<1x18x256xf32, #tpu.memory_space<vmem>>) attributes {dimension_semantics = [#tpu.dimension_semantics<parallel>], iteration_bounds = array<i64: 2>, scalar_prefetch = 0 : i64, scratch_operands = 1 : i64, tpu.core_type = #tpu.core_type<tc>, window_params = [{transform_indices = @transform_0, window_bounds = array<i64: 1, 16, 256>}, {pipeline_mode = #tpu.pipeline_mode<synchronous>, transform_indices = @transform_1, window_bounds = array<i64: 3, 256, 256>}, {transform_indices = @transform_2, window_bounds = array<i64: 1, 16, 256>}, {transform_indices = @transform_3, window_bounds = array<i64: 1, 1, 512>}]} {
    %c0 = arith.constant 0 : index
    %c0_0 = arith.constant 0 : index
    %c0_1 = arith.constant 0 : index
    %0 = vector.load %arg1[%c0, %c0_0, %c0_1] : memref<1x16x256xf32, #tpu.memory_space<vmem>>, vector<1x16x256xf32>
    %cst = arith.constant 0.000000e+00 : f32
    %1 = vector.broadcast %cst : f32 to vector<1x1x256xf32>
    %c0_2 = arith.constant 0 : index
    %c0_3 = arith.constant 0 : index
    %c0_4 = arith.constant 0 : index
    %2 = vector.load %arg5[%c0_2, %c0_3, %c0_4] : memref<1x18x256xf32, #tpu.memory_space<vmem>>, vector<1x1x256xf32>
    tpu.vector_store %arg5[%c0_2, %c0_3, %c0_4], %1 {strides = array<i32>} : memref<1x18x256xf32, #tpu.memory_space<vmem>>, vector<1x1x256xf32>,
    %c0_5 = arith.constant 0 : index
    %c17 = arith.constant 17 : index
    %c0_6 = arith.constant 0 : index
    %3 = vector.load %arg5[%c0_5, %c17, %c0_6] : memref<1x18x256xf32, #tpu.memory_space<vmem>>, vector<1x1x256xf32>
    tpu.vector_store %arg5[%c0_5, %c17, %c0_6], %1 {strides = array<i32>} : memref<1x18x256xf32, #tpu.memory_space<vmem>>, vector<1x1x256xf32>,
    %c0_7 = arith.constant 0 : index
    %c1 = arith.constant 1 : index
    %c0_8 = arith.constant 0 : index
    %4 = vector.load %arg5[%c0_7, %c1, %c0_8] : memref<1x18x256xf32, #tpu.memory_space<vmem>>, vector<1x16x256xf32>
    tpu.vector_store %arg5[%c0_7, %c1, %c0_8], %0 {strides = array<i32>} : memref<1x18x256xf32, #tpu.memory_space<vmem>>, vector<1x16x256xf32>,
    %c0_9 = arith.constant 0 : index
    %c0_10 = arith.constant 0 : index
    %c0_11 = arith.constant 0 : index
    %5 = vector.load %arg5[%c0_9, %c0_10, %c0_11] : memref<1x18x256xf32, #tpu.memory_space<vmem>>, vector<1x16x256xf32>
    %6 = vector.shape_cast %5 : vector<1x16x256xf32> to vector<16x256xf32>
    %c0_12 = arith.constant 0 : index
    %c0_13 = arith.constant 0 : index
    %c0_14 = arith.constant 0 : index
    %7 = vector.load %arg2[%c0_12, %c0_13, %c0_14] : memref<3x256x256xf32, #tpu.memory_space<vmem>>, vector<1x256x256xf32>
    %8 = vector.shape_cast %7 : vector<1x256x256xf32> to vector<256x256xf32>
    %cst_15 = arith.constant dense<0.000000e+00> : vector<16x256xf32>
    %9 = tpu.matmul %6, %8, %cst_15 {dimension_numbers = #tpu.dot_dimension_numbers<[1], [0], [0], [1], [0, 0, 1, 1], [], []>} : vector<16x256xf32>, vector<256x256xf32>, vector<16x256xf32> -> vector<16x256xf32>
    %10 = vector.shape_cast %0 : vector<1x16x256xf32> to vector<16x256xf32>
    %c1_16 = arith.constant 1 : index
    %c0_17 = arith.constant 0 : index
    %c0_18 = arith.constant 0 : index
    %11 = vector.load %arg2[%c1_16, %c0_17, %c0_18] : memref<3x256x256xf32, #tpu.memory_space<vmem>>, vector<1x256x256xf32>
    %12 = vector.shape_cast %11 : vector<1x256x256xf32> to vector<256x256xf32>
    %cst_19 = arith.constant dense<0.000000e+00> : vector<16x256xf32>
    %13 = tpu.matmul %10, %12, %cst_19 {dimension_numbers = #tpu.dot_dimension_numbers<[1], [0], [0], [1], [0, 0, 1, 1], [], []>} : vector<16x256xf32>, vector<256x256xf32>, vector<16x256xf32> -> vector<16x256xf32>
    %14 = arith.addf %9, %13 : vector<16x256xf32>
    %c0_20 = arith.constant 0 : index
    %c2 = arith.constant 2 : index
    %c0_21 = arith.constant 0 : index
    %15 = vector.load %arg5[%c0_20, %c2, %c0_21] : memref<1x18x256xf32, #tpu.memory_space<vmem>>, vector<1x16x256xf32>
    %16 = vector.shape_cast %15 : vector<1x16x256xf32> to vector<16x256xf32>
    %c2_22 = arith.constant 2 : index
    %c0_23 = arith.constant 0 : index
    %c0_24 = arith.constant 0 : index
    %17 = vector.load %arg2[%c2_22, %c0_23, %c0_24] : memref<3x256x256xf32, #tpu.memory_space<vmem>>, vector<1x256x256xf32>
    %18 = vector.shape_cast %17 : vector<1x256x256xf32> to vector<256x256xf32>
    %cst_25 = arith.constant dense<0.000000e+00> : vector<16x256xf32>
    %19 = tpu.matmul %16, %18, %cst_25 {dimension_numbers = #tpu.dot_dimension_numbers<[1], [0], [0], [1], [0, 0, 1, 1], [], []>} : vector<16x256xf32>, vector<256x256xf32>, vector<16x256xf32> -> vector<16x256xf32>
    %20 = arith.addf %14, %19 : vector<16x256xf32>
    %21 = vector.shape_cast %20 : vector<16x256xf32> to vector<1x16x256xf32>
    %c0_26 = arith.constant 0 : index
    %c0_27 = arith.constant 0 : index
    %c0_28 = arith.constant 0 : index
    %22 = vector.load %arg3[%c0_26, %c0_27, %c0_28] : memref<1x16x256xf32, #tpu.memory_space<vmem>>, vector<1x16x256xf32>
    tpu.vector_store %arg3[%c0_26, %c0_27, %c0_28], %21 {strides = array<i32>} : memref<1x16x256xf32, #tpu.memory_space<vmem>>, vector<1x16x256xf32>,
    %cst_29 = arith.constant dense<0.000000e+00> : vector<256xf32>
    %23 = vector.multi_reduction <add>, %20, %cst_29 [0] : vector<16x256xf32> to vector<256xf32>
    %24 = vector.shape_cast %23 : vector<256xf32> to vector<1x256xf32>
    %c0_30 = arith.constant 0 : index
    %c0_31 = arith.constant 0 : index
    %c0_32 = arith.constant 0 : index
    %25 = vector.load %arg4[%c0_30, %c0_31, %c0_32] : memref<1x1x512xf32, #tpu.memory_space<vmem>>, vector<1x1x256xf32>
    %26 = vector.shape_cast %25 : vector<1x1x256xf32> to vector<1x256xf32>
    %27 = vector.shape_cast %24 : vector<1x256xf32> to vector<1x1x256xf32>
    tpu.vector_store %arg4[%c0_30, %c0_31, %c0_32], %27 {strides = array<i32>} : memref<1x1x512xf32, #tpu.memory_space<vmem>>, vector<1x1x256xf32>,
    %28 = arith.mulf %20, %20 : vector<16x256xf32>
    %cst_33 = arith.constant dense<0.000000e+00> : vector<256xf32>
    %29 = vector.multi_reduction <add>, %28, %cst_33 [0] : vector<16x256xf32> to vector<256xf32>
    %30 = vector.shape_cast %29 : vector<256xf32> to vector<1x256xf32>
    %c0_34 = arith.constant 0 : index
    %c0_35 = arith.constant 0 : index
    %c256 = arith.constant 256 : index
    %31 = vector.load %arg4[%c0_34, %c0_35, %c256] : memref<1x1x512xf32, #tpu.memory_space<vmem>>, vector<1x1x256xf32>
    %32 = vector.shape_cast %31 : vector<1x1x256xf32> to vector<1x256xf32>
    %33 = vector.shape_cast %30 : vector<1x256xf32> to vector<1x1x256xf32>
    tpu.vector_store %arg4[%c0_34, %c0_35, %c256], %33 {strides = array<i32>} : memref<1x1x512xf32, #tpu.memory_space<vmem>>, vector<1x1x256xf32>,
    return
  }
  func.func @transform_0(%arg0: i32) -> (i32, i32, i32) {
    %c0_i32 = arith.constant 0 : i32
    %c0_i32_0 = arith.constant 0 : i32
    %c0_i32_1 = arith.constant 0 : i32
    return %arg0, %c0_i32, %c0_i32_0 : i32, i32, i32
  }
  func.func @transform_1(%arg0: i32) -> (i32, i32, i32) {
    %c0_i32 = arith.constant 0 : i32
    %c0_i32_0 = arith.constant 0 : i32
    %c0_i32_1 = arith.constant 0 : i32
    %c0_i32_2 = arith.constant 0 : i32
    return %c0_i32, %c0_i32_0, %c0_i32_1 : i32, i32, i32
  }
  func.func @transform_2(%arg0: i32) -> (i32, i32, i32) {
    %c0_i32 = arith.constant 0 : i32
    %c0_i32_0 = arith.constant 0 : i32
    %c0_i32_1 = arith.constant 0 : i32
    return %arg0, %c0_i32, %c0_i32_0 : i32, i32, i32
  }
  func.func @transform_3(%arg0: i32) -> (i32, i32, i32) {
    %c0_i32 = arith.constant 0 : i32
    %c0_i32_0 = arith.constant 0 : i32
    %c0_i32_1 = arith.constant 0 : i32
    return %arg0, %c0_i32, %c0_i32_0 : i32, i32, i32
  }
}

</mosaic_0001>

<bundles_post_ra>
// kernel: tpu_custom_call.1
= control target key start
LH: loop header
LB: loop body
LE: loop exit
PB: predicated region body
PF: predicated region fallthrough
CT: control target
= control target key end

     0   :  { %9 = vsyncpa [#allocation4], 0  ;;  %s1736_s0 = inlined_call_operand.hbm [shape: f32[2,16,256], index: 0, kind: input, shape index: {}]   ;;  %s1737_s1 = inlined_call_operand.hbm [shape: f32[3,256,256], index: 1, kind: input, shape index: {}]   ;;  %s1738_s2 = inlined_call_operand.hbm [shape: f32[2,16,256], index: 2, kind: output, shape index: {0}]   ;;  %s1739_s3 = inlined_call_operand.hbm [shape: f32[2,1,512], index: 3, kind: output, shape index: {1}]  }
   0x1   :  { %11 = vsyncpa [#allocation4 + $0x1], 0 }
   0x2   :  { %12 = vsyncpa [#allocation7], 0 }
   0x3   :  { %13 = vsyncpa [#allocation5], 0 }
   0x4   :  { %15 = vsyncpa [#allocation5 + $0x1], 0 }
   0x5   :  { %16 = vsyncpa [#allocation10], 0 }
   0x6   :  { %18 = vsyncpa [#allocation10 + $0x1], 0  ;;  %s1448_s12 = smov 0   ;;  %s1450_s13 = smov 0  }
   0x7   :  { %s1452_s14 = smov 0   ;;  %s1454_s15 = smov 0  }
   0x8 LB: > { %s1469_s16 = sadd.s32 4294967295, %s1416_s15   ;;  %s933_s17 = sadd.s32 4294967294, %s1416_s15   ;;  %s1416_s15 = sphi %s1454_s15, %s1761_s15   ;;  %s1412_s14 = sphi %s1452_s14, %s1760_s14   ;;  %s1408_s13 = sphi %s1450_s13, %s1759_s13   ;;  %s1404_s12 = sphi %s1448_s12, %s1758_s12  }
   0x9   : > { %p44_p0 = scmp.ne.s32.totalorder %s1408_s13, %s1404_s12  ;;  %p1740_p1 = scmp.eq.s32.totalorder %s1469_s16, 0 }
   0xa   : > { %p95_p3 = scmp.eq.s32.totalorder %s933_s17, 1  ;;  %p934_p5 = scmp.ge.s32.totalorder %s1416_s15, 1 }
   0xb   : > { %p1478_p4 = por %p1740_p1, %p44_p0  ;;  %p128_p7 = scmp.lt.s32.totalorder %s1416_s15, 3 }
   0xc   : > { %p1483_p6 = por %p95_p3, %p44_p0  ;;  %s1418_s21 = smov [#allocation6]  }
   0xd   : > { %s1743_s18 = scalar_select %p1478_p4, 1, 0 }
   0xe   : > { %s1744_s19 = scalar_select %p1483_p6, 1, 0 }
   0xf   : > { %p1488_p8 = pnand %p934_p5, %p128_p7  ;;  %s140_s22 = sshll.u32 %s1418_s21, 4  ;;  %s1492_s22 = int_to_ptr.vmem [resolvable:$true] %s140_s22 }
  0x10   : > { %s1504_s24 = sadd.s32 1, %s1416_s15   ;;  %s31_s25 = sadd.s32 1, %s1412_s14 }
  0x11   : > { %s1745_s20 = scalar_select %p1488_p8, 1, 0 }
  0x12   : > { %p1198_p9 = pneg %p1488_p8  ;;  %s28_s26 = ssub.s32 %s1416_s15, %s1504_s24 }
  0x13   : > { %s1256_s29 = scalar_lea.hbm %s1737_s1, 24576 }
  0x14   : > { %p1499_p11 = pnand %p1198_p9, %p1740_p1  ;;  %p1257_p12 = scmp.ne.s32.totalorder %s1737_s1, %s1256_s29 }
  0x15   : > { %p1263_p5 = scmp.lt.u32.totalorder %s1256_s29, %s1737_s1 }
  0x16   : > { %p1258_p13 = pneg %p1499_p11 }
  0x18   : > { %p1259_p0 = pnand %p1258_p13, %p1257_p12 }
  0x1a   : > { %p1260_p3 = pneg %p1259_p0 }
  0x1c   : > { %p1265_p7 = pnand %p1263_p5, %p1260_p3 }
  0x1e   : > { %1268 = shalt.err (!%p1265_p7)
}
  0x1f   : > { %s1269_s7 = scalar_lea.vmem %s1492_s22, 24576  ;;  %p1277_p2 = scmp.lt.s32.totalorder %s1492_s22, %s1492_s22 }
  0x20   : > { %p1270_p9 = scmp.ne.s32.totalorder %s1492_s22, %s1269_s7  ;;  %p1278_p6 = scmp.lt.s32.totalorder %s1269_s7, %s1269_s7 }
  0x22   : > { %p1272_p10 = pnand %p1270_p9, %p1258_p13  ;;  %p1279_p4 = por %p1278_p6, %p1277_p2 }
  0x24   : > { %p1273_p1 = pneg %p1272_p10 }
  0x26   : > { %p1280_p8 = pnand %p1279_p4, %p1273_p1 }
  0x28   : > { %1283 = shalt.err (!%p1280_p8)
}
  0x29   : > { %s1419_s8 = smov 256   ;;  %s1420_s9 = smov 16  }
  0x2a   : > { %1201 = dma.hbm_to_vmem [thread:$0]  (!%p1499_p11), %s1737_s1, 24576, %s1492_s22, [#allocation7], %s1419_s8, %s1419_s8, %s1420_s9  }
  0x2b   : > { %p29_p1 = scmp.eq.s32.totalorder %s28_s26, 0  ;;  %p38_p2 = scmp.ne.s32.totalorder %s1412_s14, %s1408_s13 }
  0x2c   : > { %p39_p4 = scmp.eq.s32.totalorder %s1416_s15, 0  ;;  %p1214_p6 = scmp.lt.s32.totalorder %s1416_s15, 2 }
  0x2d   : > { %s1538_s17 = scalar_select %p29_p1, %s1412_s14, %s31_s25  }
  0x2e   : > { %p40_p8 = por %p39_p4, %p38_p2  ;;  %p1747_p10 = scmp.eq.s32.totalorder %s1469_s16, 1 }
  0x2f   : > { %s154_s23 = sand.u32 1, %s1412_s14   ;;  %s953_s27 = sshll.u32 %s1416_s15, 9 }
  0x30   : > { %p1542_p12 = por %p1747_p10, %p38_p2  ;;  %s937_s28 = sshll.u32 %s154_s23, 5 }
  0x31   : > { %s1551_s4 = scalar_lea.hbm %s1736_s0, %s953_s27  ;;  %s158_s22 = scalar_lea.vmem [#allocation3], %s937_s28 }
  0x32   : > { %s165_s25 = sshll.u32 %s158_s22, 4  ;;  %p1553_p11 = pnand %p1214_p6, %p40_p8  ;;  %s1557_s25 = int_to_ptr.vmem [resolvable:$true] %s165_s25 }
  0x33   : > { %s1559_s5 = scalar_lea.sflag [#allocation4], %s154_s23  ;;  %s1284_s6 = scalar_lea.hbm %s1551_s4, 512 }
  0x34   : > { %p1285_p13 = scmp.ne.s32.totalorder %s1551_s4, %s1284_s6  ;;  %p1286_p0 = pneg %p1553_p11 }
  0x35   : > { %s1289_s11 = scalar_lea.hbm %s1736_s0, 1024  ;;  %p1290_p7 = scmp.lt.u32.totalorder %s1551_s4, %s1736_s0 }
  0x36   : > { %p1287_p3 = pnand %p1286_p0, %p1285_p13  ;;  %p1291_p9 = scmp.lt.u32.totalorder %s1289_s11, %s1284_s6 }
  0x37   : > { %p1293_p2 = scmp.lt.u32.totalorder %s1284_s6, %s1551_s4 }
  0x38   : > { %p1288_p5 = pneg %p1287_p3  ;;  %p1292_p1 = por %p1291_p9, %p1290_p7 }
  0x3a   : > { %p1294_p4 = por %p1293_p2, %p1292_p1 }
  0x3c   : > { %p1295_p6 = pnand %p1294_p4, %p1288_p5 }
  0x3e   : > { %1298 = shalt.err (!%p1295_p6)
}
  0x3f   : > { %s1299_s23 = scalar_lea.vmem %s1557_s25, 512  ;;  %s1421_s29 = smov [#allocation3]  }
  0x40   : > { %p1300_p8 = scmp.ne.s32.totalorder %s1557_s25, %s1299_s23  ;;  %s1304_s30 = sshll.u32 %s1421_s29, 4  ;;  %s1305_s30 = int_to_ptr.vmem [resolvable:$false] %s1304_s30 }
  0x41   : > { %s1306_s22 = scalar_lea.vmem %s1305_s30, 1024  ;;  %p1307_p3 = scmp.lt.s32.totalorder %s1557_s25, %s1305_s30 }
  0x42   : > { %p1302_p10 = pnand %p1300_p8, %p1286_p0  ;;  %p1308_p7 = scmp.lt.s32.totalorder %s1306_s22, %s1299_s23 }
  0x44   : > { %p1303_p13 = pneg %p1302_p10  ;;  %p1309_p9 = por %p1308_p7, %p1307_p3 }
  0x46   : > { %p1310_p1 = pnand %p1309_p9, %p1303_p13 }
  0x48   : > { %1313 = shalt.err (!%p1310_p1)
}
  0x49   : > { %1205 = dma.hbm_to_vmem [thread:$0]  (!%p1553_p11), %s1551_s4, 512, %s1557_s25, %s1559_s5, %s1419_s8, %s1419_s8, %s1420_s9  }
  0x4a   : > { %p1750_p0 = scmp.ne.s32.totalorder %s1745_s20, 0 }
  0x4b   : > { %s1593_s6 = sand.u32 (!%p1750_p0), 1, %s1408_s13   ;;  %p1751_p5 = scmp.ne.s32.totalorder (!%p1750_p0), %s1743_s18, 0 }
  0x4c   : > { %177 = sbr.rel (%p1750_p0) target bundleno = 484 (0x1e4), region = 28  ;;  %s941_s7 = sshll.u32 (!%p1750_p0), %s1593_s6, 5 }
  0x4d   : > { %s180_s10 = scalar_lea.sflag (!%p1750_p0), [#allocation4], %s1593_s6  ;;  %s1599_s26 = scalar_lea.vmem (!%p1750_p0), [#allocation3], %s941_s7 }
  0x53   : > { %1387 = dma.done.wait (%p1751_p5), %s180_s10, 512  }
  0x54   : > { %1389 = vsyncadd (%p1751_p5), %s180_s10, 4294966784  ;;  %p1752_p11 = scmp.eq.s32.totalorder %s1469_s16, 0 }
  0x56   : > { %1391 = dma.done.wait (%p1752_p11), [#allocation7], 24576   ;;  %p1753_p2 = pmov %p1752_p11 }
  0x57   : > { %v219_v0 = vlaneseq  ;;  %v1422_v2 = vmov 0.0   ;;  %v321_v3 = vld [vmem:[#allocation6 + $0x208] sm:$0xff]  ;;  %v323_v4 = vld [vmem:[#allocation6 + $0x218] sm:$0xff]  ;;  %v320_v8 = vld [vmem:[#allocation6 + $0x200] sm:$0xff]  ;;  %vm232_vm1 = vcmask 1040384   ;;  %vm615_vm2 = vcmask 1045504  }
  0x58   : > { %1393 = vsyncadd (%p1753_p2), [#allocation7], 4294942720  ;;  %v256_v5 = vld [vmem:[#allocation6 + $0x8] sm:$0xff]  ;;  %v956_v6 = vpack.c.bf16 %v323_v4, %v321_v3  ;;  %v258_v7 = vld [vmem:[#allocation6 + $0x18] sm:$0xff]  ;;  %s207_s18 = scalar_lea.vmem [#allocation8], %s941_s7  ;;  %s954_s8 = sshll.u32 %s1469_s16, 9 }
  0x59   : > { %vm1610_vm0 = vcmp.lt.s32.totalorder %v219_v0, 256  ;;  %v322_v9 = vld [vmem:[#allocation6 + $0x210] sm:$0xff]  ;;  %v1020_v10 = vpack.c.bf16 %v258_v7, %v256_v5  ;;  %v255_v12 = vld [vmem:[#allocation6] sm:$0xff]  ;;  %v325_v14 = vld [vmem:[#allocation6 + $0x228] sm:$0xff]  ;;  %s804_s20 = sshll.u32 %s207_s18, 4  ;;  %s1656_s25 = scalar_lea.hbm %s1738_s2, %s954_s8  ;;  %s1651_s20 = int_to_ptr.vmem [resolvable:$true] %s804_s20 }
  0x5a   : > { %223 = vst.msk [vmem:[#allocation2] ss:$8 sm:$0x3] %vm1610_vm0, %v1422_v2  ;;  %226 = vst.msk [vmem:[#allocation2 + $0x21] ss:$8 sm:$0x3] %vm1610_vm0, %v1422_v2  ;;  %v958_v11 = vpack.c.bf16 %v322_v9, %v320_v8  ;;  %957 = vmatprep.subr.bf16.mxu1 %v956_v6 }
  0x5b   : > { %v257_v13 = vld [vmem:[#allocation6 + $0x10] sm:$0xff]  ;;  %v327_v16 = vld [vmem:[#allocation6 + $0x238] sm:$0xff]  ;;  %v260_v17 = vld [vmem:[#allocation6 + $0x28] sm:$0xff]  ;;  %1021 = vmatprep.subr.bf16.mxu0 %v1020_v10  ;;  %s786_s5 = scalar_lea.sflag [#allocation5], %s1593_s6  ;;  %s1314_s11 = scalar_lea.vmem %s1651_s20, 512 }
  0x5c   : > { %v1022_v15 = vpack.c.bf16 %v257_v13, %v255_v12  ;;  %v262_v18 = vld [vmem:[#allocation6 + $0x38] sm:$0xff]  ;;  %959 = vmatpush1.bf16.msra.mxu1 %v958_v11  ;;  %v960_v19 = vpack.c.bf16 %v327_v16, %v325_v14  ;;  %v324_v21 = vld [vmem:[#allocation6 + $0x220] sm:$0xff]  ;;  %v326_v22 = vld [vmem:[#allocation6 + $0x230] sm:$0xff]  ;;  %p1315_p4 = scmp.ne.s32.totalorder %s1651_s20, %s1314_s11  ;;  %s1423_s27 = smov [#allocation8]  }
  0x5d   : > { %v1024_v20 = vpack.c.bf16 %v262_v18, %v260_v17  ;;  %v259_v23 = vld [vmem:[#allocation6 + $0x20] sm:$0xff]  ;;  %v962_v24 = vpack.c.bf16 %v326_v22, %v324_v21  ;;  %v261_v25 = vld [vmem:[#allocation6 + $0x30] sm:$0xff]  ;;  %v329_v26 = vld [vmem:[#allocation6 + $0x248] sm:$0xff]  ;;  %s1318_s28 = sshll.u32 %s1423_s27, 4  ;;  %s1319_s28 = int_to_ptr.vmem [resolvable:$false] %s1318_s28 }
  0x5e   : > { %1023 = vmatpush1.bf16.msra.mxu0 %v1022_v15  ;;  %v331_v27 = vld [vmem:[#allocation6 + $0x258] sm:$0xff]  ;;  %961 = vmatprep.subr.bf16.mxu1 %v960_v19  ;;  %v1026_v28 = vpack.c.bf16 %v261_v25, %v259_v23  ;;  %v264_v30 = vld [vmem:[#allocation6 + $0x48] sm:$0xff]  ;;  %v328_v32 = vld [vmem:[#allocation6 + $0x240] sm:$0xff]  ;;  %p1316_p6 = pnand %p1315_p4, %p1542_p12  ;;  %s1320_s23 = scalar_lea.vmem %s1319_s28, 1024 }
  0x5f   : > { %1025 = vmatprep.subr.bf16.mxu0 %v1024_v20  ;;  %v964_v29 = vpack.c.bf16 %v331_v27, %v329_v26  ;;  %v266_v31 = vld [vmem:[#allocation6 + $0x58] sm:$0xff]  ;;  %v330_v34 = vld [vmem:[#allocation6 + $0x250] sm:$0xff]  ;;  %v263_v35 = vld [vmem:[#allocation6 + $0x40] sm:$0xff]  ;;  %p1321_p10 = scmp.lt.s32.totalorder %s1651_s20, %s1319_s28  ;;  %p1322_p13 = scmp.lt.s32.totalorder %s1320_s23, %s1314_s11 }
  0x60   : > { %v1028_v33 = vpack.c.bf16 %v266_v31, %v264_v30  ;;  %v265_v36 = vld [vmem:[#allocation6 + $0x50] sm:$0xff]  ;;  %963 = vmatpush1.bf16.msra.mxu1 %v962_v24  ;;  %v966_v37 = vpack.c.bf16 %v330_v34, %v328_v32  ;;  %v333_v38 = vld [vmem:[#allocation6 + $0x268] sm:$0xff]  ;;  %v335_v39 = vld [vmem:[#allocation6 + $0x278] sm:$0xff]  ;;  %p1317_p8 = pneg %p1316_p6 }
  0x61   : > { %v268_v40 = vld [vmem:[#allocation6 + $0x68] sm:$0xff]  ;;  %965 = vmatprep.subr.bf16.mxu1 %v964_v29  ;;  %v1030_v41 = vpack.c.bf16 %v265_v36, %v263_v35  ;;  %v968_v42 = vpack.c.bf16 %v335_v39, %v333_v38  ;;  %v270_v43 = vld [vmem:[#allocation6 + $0x78] sm:$0xff]  ;;  %v332_v44 = vld [vmem:[#allocation6 + $0x260] sm:$0xff]  ;;  %p1323_p3 = por %p1322_p13, %p1321_p10 }
  0x62   : > { %1027 = vmatpush1.bf16.msra.mxu0 %v1026_v28  ;;  %v334_v45 = vld [vmem:[#allocation6 + $0x270] sm:$0xff]  ;;  %v1032_v46 = vpack.c.bf16 %v270_v43, %v268_v40  ;;  %v267_v47 = vld [vmem:[#allocation6 + $0x60] sm:$0xff]  ;;  %v337_v49 = vld [vmem:[#allocation6 + $0x288] sm:$0xff] }
  0x63   : > { %1029 = vmatprep.subr.bf16.mxu0 %v1028_v33  ;;  %v269_v48 = vld [vmem:[#allocation6 + $0x70] sm:$0xff]  ;;  %v339_v50 = vld [vmem:[#allocation6 + $0x298] sm:$0xff]  ;;  %v272_v51 = vld [vmem:[#allocation6 + $0x88] sm:$0xff]  ;;  %v970_v53 = vpack.c.bf16 %v334_v45, %v332_v44  ;;  %p1324_p7 = pnand %p1323_p3, %p1317_p8 }
  0x64   : > { %v274_v52 = vld [vmem:[#allocation6 + $0x98] sm:$0xff]  ;;  %967 = vmatpush1.bf16.msra.mxu1 %v966_v37  ;;  %v1034_v54 = vpack.c.bf16 %v269_v48, %v267_v47  ;;  %v972_v55 = vpack.c.bf16 %v339_v50, %v337_v49  ;;  %v336_v56 = vld [vmem:[#allocation6 + $0x280] sm:$0xff]  ;;  %v338_v57 = vld [vmem:[#allocation6 + $0x290] sm:$0xff] }
  0x65   : > { %969 = vmatprep.subr.bf16.mxu1 %v968_v42  ;;  %v271_v58 = vld [vmem:[#allocation6 + $0x80] sm:$0xff]  ;;  %v1036_v59 = vpack.c.bf16 %v274_v52, %v272_v51  ;;  %v273_v60 = vld [vmem:[#allocation6 + $0x90] sm:$0xff]  ;;  %v341_v61 = vld [vmem:[#allocation6 + $0x2a8] sm:$0xff]  ;;  %v974_v3 = vpack.c.bf16 %v338_v57, %v336_v56 }
  0x66   : > { %1031 = vmatpush1.bf16.msra.mxu0 %v1030_v41  ;;  %v343_v62 = vld [vmem:[#allocation6 + $0x2b8] sm:$0xff]  ;;  %v276_v63 = vld [vmem:[#allocation6 + $0xa8] sm:$0xff]  ;;  %v1038_v4 = vpack.c.bf16 %v273_v60, %v271_v58  ;;  %v340_v6 = vld [vmem:[#allocation6 + $0x2a0] sm:$0xff] }
  0x67   : > { %1033 = vmatprep.subr.bf16.mxu0 %v1032_v46  ;;  %v278_v2 = vld [vmem:[#allocation6 + $0xb8] sm:$0xff]  ;;  %v976_v5 = vpack.c.bf16 %v343_v62, %v341_v61  ;;  %v342_v7 = vld [vmem:[#allocation6 + $0x2b0] sm:$0xff]  ;;  %v275_v8 = vld [vmem:[#allocation6 + $0xa0] sm:$0xff] }
  0x68   : > { %971 = vmatpush1.bf16.msra.mxu1 %v970_v53  ;;  %v1040_v9 = vpack.c.bf16 %v278_v2, %v276_v63  ;;  %v277_v10 = vld [vmem:[#allocation6 + $0xb0] sm:$0xff]  ;;  %v345_v11 = vld [vmem:[#allocation6 + $0x2c8] sm:$0xff]  ;;  %v347_v12 = vld [vmem:[#allocation6 + $0x2d8] sm:$0xff]  ;;  %v978_v15 = vpack.c.bf16 %v342_v7, %v340_v6 }
  0x69   : > { %973 = vmatprep.subr.bf16.mxu1 %v972_v55  ;;  %v280_v13 = vld [vmem:[#allocation6 + $0xc8] sm:$0xff]  ;;  %v282_v14 = vld [vmem:[#allocation6 + $0xd8] sm:$0xff]  ;;  %v1042_v16 = vpack.c.bf16 %v277_v10, %v275_v8  ;;  %v980_v17 = vpack.c.bf16 %v347_v12, %v345_v11  ;;  %v344_v18 = vld [vmem:[#allocation6 + $0x2c0] sm:$0xff] }
  0x6a   : > { %1035 = vmatpush1.bf16.msra.mxu0 %v1034_v54  ;;  %v346_v19 = vld [vmem:[#allocation6 + $0x2d0] sm:$0xff]  ;;  %v279_v20 = vld [vmem:[#allocation6 + $0xc0] sm:$0xff]  ;;  %v1044_v21 = vpack.c.bf16 %v282_v14, %v280_v13  ;;  %v349_v23 = vld [vmem:[#allocation6 + $0x2e8] sm:$0xff] }
  0x6b   : > { %1037 = vmatprep.subr.bf16.mxu0 %v1036_v59  ;;  %v281_v22 = vld [vmem:[#allocation6 + $0xd0] sm:$0xff]  ;;  %v351_v24 = vld [vmem:[#allocation6 + $0x2f8] sm:$0xff]  ;;  %v284_v25 = vld [vmem:[#allocation6 + $0xe8] sm:$0xff]  ;;  %v982_v27 = vpack.c.bf16 %v346_v19, %v344_v18 }
  0x6c   : > { %975 = vmatpush1.bf16.msra.mxu1 %v974_v3  ;;  %v286_v26 = vld [vmem:[#allocation6 + $0xf8] sm:$0xff]  ;;  %v1046_v28 = vpack.c.bf16 %v281_v22, %v279_v20  ;;  %v984_v29 = vpack.c.bf16 %v351_v24, %v349_v23  ;;  %v348_v30 = vld [vmem:[#allocation6 + $0x2e0] sm:$0xff]  ;;  %v350_v31 = vld [vmem:[#allocation6 + $0x2f0] sm:$0xff] }
  0x6d   : > { %977 = vmatprep.subr.bf16.mxu1 %v976_v5  ;;  %v283_v32 = vld [vmem:[#allocation6 + $0xe0] sm:$0xff]  ;;  %v1048_v33 = vpack.c.bf16 %v286_v26, %v284_v25  ;;  %v285_v34 = vld [vmem:[#allocation6 + $0xf0] sm:$0xff]  ;;  %v353_v35 = vld [vmem:[#allocation6 + $0x308] sm:$0xff]  ;;  %v986_v39 = vpack.c.bf16 %v350_v31, %v348_v30 }
  0x6e   : > { %1039 = vmatpush1.bf16.msra.mxu0 %v1038_v4  ;;  %v355_v36 = vld [vmem:[#allocation6 + $0x318] sm:$0xff]  ;;  %v288_v37 = vld [vmem:[#allocation6 + $0x108] sm:$0xff]  ;;  %v1050_v40 = vpack.c.bf16 %v285_v34, %v283_v32  ;;  %v352_v42 = vld [vmem:[#allocation6 + $0x300] sm:$0xff] }
  0x6f   : > { %1041 = vmatprep.subr.bf16.mxu0 %v1040_v9  ;;  %v290_v38 = vld [vmem:[#allocation6 + $0x118] sm:$0xff]  ;;  %v988_v41 = vpack.c.bf16 %v355_v36, %v353_v35  ;;  %v354_v43 = vld [vmem:[#allocation6 + $0x310] sm:$0xff]  ;;  %v287_v44 = vld [vmem:[#allocation6 + $0x100] sm:$0xff] }
  0x70   : > { %979 = vmatpush1.bf16.msra.mxu1 %v978_v15  ;;  %v1052_v45 = vpack.c.bf16 %v290_v38, %v288_v37  ;;  %v289_v46 = vld [vmem:[#allocation6 + $0x110] sm:$0xff]  ;;  %v357_v47 = vld [vmem:[#allocation6 + $0x328] sm:$0xff]  ;;  %v359_v48 = vld [vmem:[#allocation6 + $0x338] sm:$0xff]  ;;  %v990_v51 = vpack.c.bf16 %v354_v43, %v352_v42 }
  0x71   : > { %981 = vmatprep.subr.bf16.mxu1 %v980_v17  ;;  %v292_v49 = vld [vmem:[#allocation6 + $0x128] sm:$0xff]  ;;  %v294_v50 = vld [vmem:[#allocation6 + $0x138] sm:$0xff]  ;;  %v1054_v52 = vpack.c.bf16 %v289_v46, %v287_v44  ;;  %v992_v53 = vpack.c.bf16 %v359_v48, %v357_v47  ;;  %v356_v54 = vld [vmem:[#allocation6 + $0x320] sm:$0xff] }
  0x72   : > { %1043 = vmatpush1.bf16.msra.mxu0 %v1042_v16  ;;  %v358_v55 = vld [vmem:[#allocation6 + $0x330] sm:$0xff]  ;;  %v291_v56 = vld [vmem:[#allocation6 + $0x120] sm:$0xff]  ;;  %v1056_v57 = vpack.c.bf16 %v294_v50, %v292_v49  ;;  %v361_v59 = vld [vmem:[#allocation6 + $0x348] sm:$0xff] }
  0x73   : > { %1045 = vmatprep.subr.bf16.mxu0 %v1044_v21  ;;  %v293_v58 = vld [vmem:[#allocation6 + $0x130] sm:$0xff]  ;;  %v363_v60 = vld [vmem:[#allocation6 + $0x358] sm:$0xff]  ;;  %v296_v61 = vld [vmem:[#allocation6 + $0x148] sm:$0xff]  ;;  %v994_v63 = vpack.c.bf16 %v358_v55, %v356_v54 }
  0x74   : > { %983 = vmatpush1.bf16.msra.mxu1 %v982_v27  ;;  %v298_v62 = vld [vmem:[#allocation6 + $0x158] sm:$0xff]  ;;  %v1058_v2 = vpack.c.bf16 %v293_v58, %v291_v56  ;;  %v996_v3 = vpack.c.bf16 %v363_v60, %v361_v59  ;;  %v360_v4 = vld [vmem:[#allocation6 + $0x340] sm:$0xff]  ;;  %v362_v5 = vld [vmem:[#allocation6 + $0x350] sm:$0xff] }
  0x75   : > { %985 = vmatprep.subr.bf16.mxu1 %v984_v29  ;;  %v295_v6 = vld [vmem:[#allocation6 + $0x140] sm:$0xff]  ;;  %v1060_v7 = vpack.c.bf16 %v298_v62, %v296_v61  ;;  %v297_v8 = vld [vmem:[#allocation6 + $0x150] sm:$0xff]  ;;  %v365_v9 = vld [vmem:[#allocation6 + $0x368] sm:$0xff]  ;;  %v998_v13 = vpack.c.bf16 %v362_v5, %v360_v4 }
  0x76   : > { %1047 = vmatpush1.bf16.msra.mxu0 %v1046_v28  ;;  %v367_v10 = vld [vmem:[#allocation6 + $0x378] sm:$0xff]  ;;  %v300_v11 = vld [vmem:[#allocation6 + $0x168] sm:$0xff]  ;;  %v364_v14 = vld [vmem:[#allocation6 + $0x360] sm:$0xff]  ;;  %v1062_v15 = vpack.c.bf16 %v297_v8, %v295_v6 }
  0x77   : > { %1049 = vmatprep.subr.bf16.mxu0 %v1048_v33  ;;  %v302_v12 = vld [vmem:[#allocation6 + $0x178] sm:$0xff]  ;;  %v1000_v16 = vpack.c.bf16 %v367_v10, %v365_v9  ;;  %v366_v17 = vld [vmem:[#allocation6 + $0x370] sm:$0xff]  ;;  %v299_v18 = vld [vmem:[#allocation6 + $0x160] sm:$0xff] }
  0x78   : > { %987 = vmatpush1.bf16.msra.mxu1 %v986_v39  ;;  %v301_v19 = vld [vmem:[#allocation6 + $0x170] sm:$0xff]  ;;  %v1064_v20 = vpack.c.bf16 %v302_v12, %v300_v11  ;;  %v369_v21 = vld [vmem:[#allocation6 + $0x388] sm:$0xff]  ;;  %v371_v22 = vld [vmem:[#allocation6 + $0x398] sm:$0xff]  ;;  %v1002_v28 = vpack.c.bf16 %v366_v17, %v364_v14 }
  0x79   : > { %989 = vmatprep.subr.bf16.mxu1 %v988_v41  ;;  %v1619_v23 = vld [vmem:[%s1599_s26 + $0x8] sm:$0xff]  ;;  %v306_v25 = vld [vmem:[#allocation6 + $0x198] sm:$0xff]  ;;  %v1624_v27 = vld [vmem:[%s1599_s26] sm:$0xff]  ;;  %v1066_v30 = vpack.c.bf16 %v301_v19, %v299_v18  ;;  %v1004_v31 = vpack.c.bf16 %v371_v22, %v369_v21 }
  0x7a   : > { %1051 = vmatpush1.bf16.msra.mxu0 %v1050_v40  ;;  %v304_v24 = vld [vmem:[#allocation6 + $0x188] sm:$0xff]  ;;  %v234_v26 = vrot.slane %v1619_v23, 7  ;;  %448 = vmatprep.mubr.f32.mxu1 %v1619_v23  ;;  %v233_v29 = vrot.slane %v1624_v27, 7  ;;  %v368_v32 = vld [vmem:[#allocation6 + $0x380] sm:$0xff]  ;;  %v370_v33 = vld [vmem:[#allocation6 + $0x390] sm:$0xff] }
  0x7b   : > { %1053 = vmatprep.subr.bf16.mxu0 %v1052_v45  ;;  %v303_v34 = vld [vmem:[#allocation6 + $0x180] sm:$0xff]  ;;  %v1068_v35 = vpack.c.bf16 %v306_v25, %v304_v24  ;;  %v305_v36 = vld [vmem:[#allocation6 + $0x190] sm:$0xff]  ;;  %v373_v37 = vld [vmem:[#allocation6 + $0x3a8] sm:$0xff]  ;;  %v1006_v41 = vpack.c.bf16 %v370_v33, %v368_v32 }
  0x7c   : > { %991 = vmatpush1.bf16.msra.mxu1 %v990_v51  ;;  %246 = vst [vmem:[#allocation2 + $0x8] sm:$0xfe] %v234_v26  ;;  %v375_v38 = vld [vmem:[#allocation6 + $0x3b8] sm:$0xff]  ;;  %245 = vst [vmem:[#allocation2] sm:$0xfe] %v233_v29  ;;  %v308_v39 = vld [vmem:[#allocation6 + $0x1a8] sm:$0xff]  ;;  %v1070_v42 = vpack.c.bf16 %v305_v36, %v303_v34 }
  0x7d   : > { %993 = vmatprep.subr.bf16.mxu1 %v992_v53  ;;  %v310_v40 = vld [vmem:[#allocation6 + $0x1b8] sm:$0xff]  ;;  %v1008_v43 = vpack.c.bf16 %v375_v38, %v373_v37  ;;  %v372_v44 = vld [vmem:[#allocation6 + $0x3a0] sm:$0xff]  ;;  %v374_v45 = vld [vmem:[#allocation6 + $0x3b0] sm:$0xff] }
  0x7e   : > { %1055 = vmatpush1.bf16.msra.mxu0 %v1054_v52  ;;  %v307_v46 = vld [vmem:[#allocation6 + $0x1a0] sm:$0xff]  ;;  %v1072_v47 = vpack.c.bf16 %v310_v40, %v308_v39  ;;  %v309_v48 = vld [vmem:[#allocation6 + $0x1b0] sm:$0xff]  ;;  %v377_v49 = vld [vmem:[#allocation6 + $0x3c8] sm:$0xff]  ;;  %v1010_v53 = vpack.c.bf16 %v374_v45, %v372_v44 }
  0x7f   : > { %1057 = vmatprep.subr.bf16.mxu0 %v1056_v57  ;;  %v379_v50 = vld [vmem:[#allocation6 + $0x3d8] sm:$0xff]  ;;  %v312_v51 = vld [vmem:[#allocation6 + $0x1c8] sm:$0xff]  ;;  %v1074_v55 = vpack.c.bf16 %v309_v48, %v307_v46  ;;  %v376_v57 = vld [vmem:[#allocation6 + $0x3c0] sm:$0xff] }
  0x80   : > { %995 = vmatpush1.bf16.msra.mxu1 %v994_v63  ;;  %v314_v52 = vld [vmem:[#allocation6 + $0x1d8] sm:$0xff]  ;;  %v1012_v56 = vpack.c.bf16 %v379_v50, %v377_v49  ;;  %v378_v58 = vld [vmem:[#allocation6 + $0x3d0] sm:$0xff]  ;;  %v311_v59 = vld [vmem:[#allocation6 + $0x1c0] sm:$0xff] }
  0x81   : > { %997 = vmatprep.subr.bf16.mxu1 %v996_v3  ;;  %v1076_v60 = vpack.c.bf16 %v314_v52, %v312_v51  ;;  %v313_v61 = vld [vmem:[#allocation6 + $0x1d0] sm:$0xff]  ;;  %v381_v62 = vld [vmem:[#allocation6 + $0x3e8] sm:$0xff]  ;;  %v383_v63 = vld [vmem:[#allocation6 + $0x3f8] sm:$0xff]  ;;  %v1014_v4 = vpack.c.bf16 %v378_v58, %v376_v57 }
  0x82   : > { %1059 = vmatpush1.bf16.msra.mxu0 %v1058_v2  ;;  %v316_v2 = vld [vmem:[#allocation6 + $0x1e8] sm:$0xff]  ;;  %v318_v3 = vld [vmem:[#allocation6 + $0x1f8] sm:$0xff]  ;;  %v1078_v5 = vpack.c.bf16 %v313_v61, %v311_v59  ;;  %v1016_v6 = vpack.c.bf16 %v383_v63, %v381_v62  ;;  %v382_v8 = vld [vmem:[#allocation6 + $0x3f0] sm:$0xff] }
  0x83   : > { %1061 = vmatprep.subr.bf16.mxu0 %v1060_v7  ;;  %v252_v54 = vld [vmem:[#allocation2 + $0x8] sm:$0xff]  ;;  %v380_v7 = vld [vmem:[#allocation6 + $0x3e0] sm:$0xff]  ;;  %v1080_v10 = vpack.c.bf16 %v318_v3, %v316_v2  ;;  %v317_v11 = vld [vmem:[#allocation6 + $0x1f0] sm:$0xff] }
  0x84   : > { %999 = vmatpush1.bf16.msra.mxu1 %v998_v13  ;;  %525 = vmatprep.mubr.f32.mxu0 %v252_v54  ;;  %v315_v9 = vld [vmem:[#allocation6 + $0x1e0] sm:$0xff]  ;;  %v546_v12 = vld [vmem:[#allocation6 + $0x408] sm:$0xff]  ;;  %v548_v13 = vld [vmem:[#allocation6 + $0x418] sm:$0xff]  ;;  %v1018_v14 = vpack.c.bf16 %v382_v8, %v380_v7 }
  0x85   : > { %1001 = vmatprep.subr.bf16.mxu1 %v1000_v16  ;;  %v1084_v16 = vpack.c.bf16 %v548_v13, %v546_v12  ;;  %v545_v17 = vld [vmem:[#allocation6 + $0x400] sm:$0xff]  ;;  %v547_v18 = vld [vmem:[#allocation6 + $0x410] sm:$0xff]  ;;  %v550_v19 = vld [vmem:[#allocation6 + $0x428] sm:$0xff] }
  0x86   : > { %1063 = vmatpush1.bf16.msra.mxu0 %v1062_v15  ;;  %v1082_v15 = vpack.c.bf16 %v317_v11, %v315_v9  ;;  %v1086_v21 = vpack.c.bf16 %v547_v18, %v545_v17  ;;  %v218_v22 = vld [vmem:[%s1599_s26 + $0x18] sm:$0xff]  ;;  %v217_v24 = vld [vmem:[%s1599_s26 + $0x10] sm:$0xff]  ;;  %v554_v34 = vld [vmem:[#allocation6 + $0x448] sm:$0xff] }
  0x87   : > { %1065 = vmatprep.subr.bf16.mxu0 %v1064_v20  ;;  %v552_v20 = vld [vmem:[#allocation6 + $0x438] sm:$0xff]  ;;  %v251_v25 = vld [vmem:[#allocation2] sm:$0xff]  ;;  %v237_v32 = vrot.slane %v218_v22, 7  ;;  %v235_v33 = vrot.slane %v217_v24, 7  ;;  %v557_v46 = vld [vmem:[#allocation6 + $0x460] sm:$0xff] }
  0x88   : > { %1003 = vmatpush1.bf16.msra.mxu1 %v1002_v28  ;;  %v1088_v28 = vpack.c.bf16 %v552_v20, %v550_v19  ;;  %v539_v36 = vld [vmem:[#allocation2 + $0x8] sm:$0xfc]  ;;  %v555_v23 = vld [vmem:[#allocation6 + $0x450] sm:$0xff]  ;;  %v562_v48 = vld [vmem:[#allocation6 + $0x488] sm:$0xff] }
  0x89   : > { %1005 = vmatprep.subr.bf16.mxu1 %v1004_v31  ;;  %v551_v31 = vld [vmem:[#allocation6 + $0x430] sm:$0xff]  ;;  %v238_v37 = vsel %vm232_vm1, %v234_v26, %v237_v32  ;;  %250 = vst [vmem:[#allocation2 + $0x28] sm:$0x1] %v237_v32  ;;  %v1640_v38 = vsel %vm232_vm1, %v233_v29, %v235_v33  ;;  %249 = vst [vmem:[#allocation2 + $0x20] sm:$0x1] %v235_v33  ;;  %v619_v39 = vrot.slane %v539_v36, 2 }
  0x8a   : > { %1067 = vmatpush1.bf16.msra.mxu0 %v1066_v30  ;;  %v549_v30 = vld [vmem:[#allocation6 + $0x420] sm:$0xff]  ;;  %v558_v26 = vld [vmem:[#allocation6 + $0x468] sm:$0xff]  ;;  %v560_v44 = vld [vmem:[#allocation6 + $0x478] sm:$0xff] }
  0x8b   : > { %1069 = vmatprep.subr.bf16.mxu0 %v1068_v35  ;;  %v556_v35 = vld [vmem:[#allocation6 + $0x458] sm:$0xff]  ;;  %v1090_v40 = vpack.c.bf16 %v551_v31, %v549_v30  ;;  %v1096_v45 = vpack.c.bf16 %v560_v44, %v558_v26  ;;  %v561_v54 = vld [vmem:[#allocation6 + $0x480] sm:$0xff]  ;;  %v566_v57 = vld [vmem:[#allocation6 + $0x4a8] sm:$0xff] }
  0x8c   : > { %1007 = vmatpush1.bf16.msra.mxu1 %v1006_v41  ;;  %v620_v41 = vrot.slane %v238_v37, 2  ;;  %v564_v49 = vld [vmem:[#allocation6 + $0x498] sm:$0xff]  ;;  %v565_v61 = vld [vmem:[#allocation6 + $0x4a0] sm:$0xff]  ;;  %v567_v62 = vld [vmem:[#allocation6 + $0x4b0] sm:$0xff] }
  0x8d   : > { %1009 = vmatprep.subr.bf16.mxu1 %v1008_v43  ;;  %v553_v43 = vld [vmem:[#allocation6 + $0x440] sm:$0xff]  ;;  %v568_v58 = vld [vmem:[#allocation6 + $0x4b8] sm:$0xff]  ;;  %v570_v63 = vld [vmem:[#allocation6 + $0x4c8] sm:$0xff]  ;;  %v1106_v3 = vpack.c.bf16 %v567_v62, %v565_v61 }
  0x8e   : > { %1071 = vmatpush1.bf16.msra.mxu0 %v1070_v42  ;;  %v1092_v42 = vpack.c.bf16 %v556_v35, %v554_v34  ;;  %v1094_v29 = vpack.c.bf16 %v555_v23, %v553_v43  ;;  %v572_v2 = vld [vmem:[#allocation6 + $0x4d8] sm:$0xff]  ;;  %v574_v7 = vld [vmem:[#allocation6 + $0x4e8] sm:$0xff]  ;;  %v573_v11 = vld [vmem:[#allocation6 + $0x4e0] sm:$0xff] }
  0x8f   : > { %1073 = vmatprep.subr.bf16.mxu0 %v1072_v47  ;;  %v559_v47 = vld [vmem:[#allocation6 + $0x470] sm:$0xff]  ;;  %v576_v8 = vld [vmem:[#allocation6 + $0x4f8] sm:$0xff]  ;;  %v578_v13 = vld [vmem:[#allocation6 + $0x508] sm:$0xff] }
  0x90   : > { %1011 = vmatpush1.bf16.msra.mxu1 %v1010_v53  ;;  %v543_v50 = vld [vmem:[#allocation2 + $0x28] sm:$0x3]  ;;  %v1098_v52 = vpack.c.bf16 %v559_v47, %v557_v46  ;;  %v1100_v53 = vpack.c.bf16 %v564_v49, %v562_v48  ;;  %v575_v12 = vld [vmem:[#allocation6 + $0x4f0] sm:$0xff]  ;;  %v577_v17 = vld [vmem:[#allocation6 + $0x500] sm:$0xff] }
  0x91   : > { %1013 = vmatprep.subr.bf16.mxu1 %v1012_v56  ;;  %v624_v51 = vrot.slane %v543_v50, 2  ;;  %v579_v18 = vld [vmem:[#allocation6 + $0x510] sm:$0xff]  ;;  %v582_v19 = vld [vmem:[#allocation6 + $0x528] sm:$0xff]  ;;  %v584_v20 = vld [vmem:[#allocation6 + $0x538] sm:$0xff] }
  0x92   : > { %1075 = vmatpush1.bf16.msra.mxu0 %v1074_v55  ;;  %v563_v55 = vld [vmem:[#allocation6 + $0x490] sm:$0xff]  ;;  %v588_v30 = vld [vmem:[#allocation6 + $0x558] sm:$0xff]  ;;  %v585_v33 = vld [vmem:[#allocation6 + $0x540] sm:$0xff] }
  0x93   : > { %1077 = vmatprep.subr.bf16.mxu0 %v1076_v60  ;;  %v625_v56 = vsel %vm615_vm2, %v620_v41, %v624_v51  ;;  %v1102_v59 = vpack.c.bf16 %v563_v55, %v561_v54  ;;  %v1104_v60 = vpack.c.bf16 %v568_v58, %v566_v57  ;;  %v587_v34 = vld [vmem:[#allocation6 + $0x550] sm:$0xff]  ;;  %v590_v35 = vld [vmem:[#allocation6 + $0x568] sm:$0xff]  ;;  %v592_v36 = vld [vmem:[#allocation6 + $0x578] sm:$0xff] }
  0x94   : > { %1015 = vmatpush1.bf16.msra.mxu1 %v1014_v4  ;;  %v1108_v4 = vpack.c.bf16 %v572_v2, %v570_v63  ;;  %v596_v43 = vld [vmem:[#allocation6 + $0x598] sm:$0xff]  ;;  %v593_v44 = vld [vmem:[#allocation6 + $0x580] sm:$0xff]  ;;  %v599_v49 = vld [vmem:[#allocation6 + $0x5b0] sm:$0xff] }
  0x95   : > { %1017 = vmatprep.subr.bf16.mxu1 %v1016_v6  ;;  %v571_v6 = vld [vmem:[#allocation6 + $0x4d0] sm:$0xff]  ;;  %v597_v48 = vld [vmem:[#allocation6 + $0x5a0] sm:$0xff]  ;;  %v602_v50 = vld [vmem:[#allocation6 + $0x5c8] sm:$0xff] }
  0x96   : > { %1079 = vmatpush1.bf16.msra.mxu0 %v1078_v5  ;;  %v569_v5 = vld [vmem:[#allocation6 + $0x4c0] sm:$0xff]  ;;  %v604_v51 = vld [vmem:[#allocation6 + $0x5d8] sm:$0xff]  ;;  %v603_v55 = vld [vmem:[#allocation6 + $0x5d0] sm:$0xff] }
  0x97   : > { %1081 = vmatprep.subr.bf16.mxu0 %v1080_v10  ;;  %v1110_v9 = vpack.c.bf16 %v571_v6, %v569_v5  ;;  %v1112_v10 = vpack.c.bf16 %v576_v8, %v574_v7  ;;  %v601_v54 = vld [vmem:[#allocation6 + $0x5c0] sm:$0xff]  ;;  %v608_v57 = vld [vmem:[#allocation6 + $0x5f8] sm:$0xff]  ;;  %v607_v61 = vld [vmem:[#allocation6 + $0x5f0] sm:$0xff] }
  0x98   : > { %1019 = vmatpush1.bf16.msra.mxu1 %v1018_v14  ;;  %v580_v14 = vld [vmem:[#allocation6 + $0x518] sm:$0xff]  ;;  %v1142_v58 = vpack.c.bf16 %v603_v55, %v601_v54  ;;  %v542_v62 = vld [vmem:[#allocation2 + $0x20] sm:$0x3]  ;;  %v538_v63 = vld [vmem:[#allocation2] sm:$0xfc] }
  0x99   : > { %1148 = vmatprep.subr.bf16.mxu1 %v1084_v16  ;;  %v616_v5 = vrot.slane %v538_v63, 2 }
  0x9a   : > { %1083 = vmatpush1.bf16.msra.mxu0 %v1082_v15  ;;  %v1114_v15 = vpack.c.bf16 %v575_v12, %v573_v11 }
  0x9b   : > { %1085 = vmatprep.subr.bf16.mxu0 %v1084_v16  ;;  %449 = vmatmul.mubr.f32.vlgmr.msra.gmra.mrb[0].mxu1 %v1624_v27  ;;  %v621_v27 = vsel %vm615_vm2, %v619_v39, %v620_v41  ;;  %v1116_v16 = vpack.c.bf16 %v580_v14, %v578_v13  ;;  %v1128_v39 = vpack.c.bf16 %v592_v36, %v590_v35  ;;  %v591_v41 = vld [vmem:[#allocation6 + $0x570] sm:$0xff] }
  0x9c   : > { %1164 = vmatpush1.bf16.msra.mxu1 %v1086_v21  ;;  %454 = vmatprep.mubr.f32.mxu1 %v218_v22  ;;  %v1120_v22 = vpack.c.bf16 %v584_v20, %v582_v19 }
  0x9d   : > { %526 = vmatmul.mubr.f32.vlgmr.msra.gmra.mrb[0].mxu0 %v251_v25  ;;  %1149 = vmatprep.subr.bf16.mxu1 %v1088_v28  ;;  %v583_v25 = vld [vmem:[#allocation6 + $0x530] sm:$0xff] }
  0x9e   : > { %1087 = vmatpush1.bf16.msra.mxu0 %v1086_v21  ;;  %531 = vmatprep.mubr.f32.mxu0 %v238_v37  ;;  %v1118_v21 = vpack.c.bf16 %v579_v18, %v577_v17  ;;  %v1126_v37 = vpack.c.bf16 %v587_v34, %v585_v33 }
  0x9f   : > { %1089 = vmatprep.subr.bf16.mxu0 %v1088_v28  ;;  %455 = vmatmul.mubr.f32.gmra.mrb[2].mxu1 %v217_v24  ;;  %v581_v24 = vld [vmem:[#allocation6 + $0x520] sm:$0xff]  ;;  %v586_v28 = vld [vmem:[#allocation6 + $0x548] sm:$0xff] }
  0xa0   : > { %1165 = vmatpush1.bf16.msra.mxu1 %v1090_v40  ;;  %700 = vmatprep.mubr.f32.mxu1 %v625_v56  ;;  %v1122_v31 = vpack.c.bf16 %v583_v25, %v581_v24  ;;  %v1124_v32 = vpack.c.bf16 %v588_v30, %v586_v28  ;;  %v606_v56 = vld [vmem:[#allocation6 + $0x5e8] sm:$0xff] }
  0xa1   : > { %532 = vmatmul.mubr.f32.gmra.mrb[2].mxu0 %v1640_v38  ;;  %1150 = vmatprep.subr.bf16.mxu1 %v1092_v42 }
  0xa2   : > { %1091 = vmatpush1.bf16.msra.mxu0 %v1090_v40  ;;  %694 = vmatprep.mubr.f32.mxu0 %v621_v27  ;;  %v589_v40 = vld [vmem:[#allocation6 + $0x560] sm:$0xff]  ;;  %v595_v27 = vld [vmem:[#allocation6 + $0x590] sm:$0xff] }
  0xa3   : > { %1093 = vmatprep.subr.bf16.mxu0 %v1092_v42  ;;  %v594_v42 = vld [vmem:[#allocation6 + $0x588] sm:$0xff]  ;;  %v1130_v23 = vpack.c.bf16 %v591_v41, %v589_v40  ;;  %v1134_v46 = vpack.c.bf16 %v595_v27, %v593_v44 }
  0xa4   : > { %1166 = vmatpush1.bf16.msra.mxu1 %v1094_v29  ;;  %v1132_v26 = vpack.c.bf16 %v596_v43, %v594_v42 }
  0xa5   : > { %1151 = vmatprep.subr.bf16.mxu1 %v1096_v45 }
  0xa6   : > { %1095 = vmatpush1.bf16.msra.mxu0 %v1094_v29  ;;  %v598_v29 = vld [vmem:[#allocation6 + $0x5a8] sm:$0xff] }
  0xa7   : > { %1097 = vmatprep.subr.bf16.mxu0 %v1096_v45  ;;  %v600_v45 = vld [vmem:[#allocation6 + $0x5b8] sm:$0xff] }
  0xa8   : > { %1167 = vmatpush1.bf16.msra.mxu1 %v1098_v52  ;;  %v1136_v47 = vpack.c.bf16 %v600_v45, %v598_v29 }
  0xa9   : > { %1152 = vmatprep.subr.bf16.mxu1 %v1100_v53 }
  0xaa   : > { %1099 = vmatpush1.bf16.msra.mxu0 %v1098_v52  ;;  %v1138_v52 = vpack.c.bf16 %v599_v49, %v597_v48 }
  0xab   : > { %1101 = vmatprep.subr.bf16.mxu0 %v1100_v53  ;;  %v1140_v53 = vpack.c.bf16 %v604_v51, %v602_v50 }
  0xac   : > { %1168 = vmatpush1.bf16.msra.mxu1 %v1102_v59 }
  0xad   : > { %1153 = vmatprep.subr.bf16.mxu1 %v1104_v60 }
  0xae   : > { %1103 = vmatpush1.bf16.msra.mxu0 %v1102_v59  ;;  %v1144_v59 = vpack.c.bf16 %v608_v57, %v606_v56 }
  0xaf   : > { %1105 = vmatprep.subr.bf16.mxu0 %v1104_v60  ;;  %v605_v60 = vld [vmem:[#allocation6 + $0x5e0] sm:$0xff] }
  0xb0   : > { %1169 = vmatpush1.bf16.msra.mxu1 %v1106_v3  ;;  %v1146_v2 = vpack.c.bf16 %v607_v61, %v605_v60 }
  0xb1   : > { %1154 = vmatprep.subr.bf16.mxu1 %v1108_v4 }
  0xb2   : > { %1107 = vmatpush1.bf16.msra.mxu0 %v1106_v3  ;;  %v617_v3 = vrot.slane %v1640_v38, 2 }
  0xb3   : > { %1109 = vmatprep.subr.bf16.mxu0 %v1108_v4  ;;  %v622_v4 = vrot.slane %v542_v62, 2 }
  0xb4   : > { %1170 = vmatpush1.bf16.msra.mxu1 %v1110_v9  ;;  %v618_v7 = vsel %vm615_vm2, %v616_v5, %v617_v3 }
  0xb5   : > { %1155 = vmatprep.subr.bf16.mxu1 %v1112_v10  ;;  %v623_v6 = vsel %vm615_vm2, %v617_v3, %v622_v4 }
  0xb6   : > { %1111 = vmatpush1.bf16.msra.mxu0 %v1110_v9 }
  0xb7   : > { %1113 = vmatprep.subr.bf16.mxu0 %v1112_v10 }
  0xb8   : > { %1171 = vmatpush1.bf16.msra.mxu1 %v1114_v15 }
  0xb9   : > { %1156 = vmatprep.subr.bf16.mxu1 %v1116_v16 }
  0xba   : > { %1115 = vmatpush1.bf16.msra.mxu0 %v1114_v15 }
  0xbb   : > { %1117 = vmatprep.subr.bf16.mxu0 %v1116_v16 }
  0xbc   : > { %1172 = vmatpush1.bf16.msra.mxu1 %v1118_v21 }
  0xbd   : > { %1157 = vmatprep.subr.bf16.mxu1 %v1120_v22 }
  0xbe   : > { %1119 = vmatpush1.bf16.msra.mxu0 %v1118_v21 }
  0xbf   : > { %1121 = vmatprep.subr.bf16.mxu0 %v1120_v22 }
  0xc0   : > { %1173 = vmatpush1.bf16.msra.mxu1 %v1122_v31 }
  0xc1   : > { %1158 = vmatprep.subr.bf16.mxu1 %v1124_v32 }
  0xc2   : > { %1123 = vmatpush1.bf16.msra.mxu0 %v1122_v31 }
  0xc3   : > { %1125 = vmatprep.subr.bf16.mxu0 %v1124_v32 }
  0xc4   : > { %1174 = vmatpush1.bf16.msra.mxu1 %v1126_v37 }
  0xc5   : > { %1159 = vmatprep.subr.bf16.mxu1 %v1128_v39 }
  0xc6   : > { %1127 = vmatpush1.bf16.msra.mxu0 %v1126_v37 }
  0xc7   : > { %1129 = vmatprep.subr.bf16.mxu0 %v1128_v39 }
  0xc8   : > { %1175 = vmatpush1.bf16.msra.mxu1 %v1130_v23 }
  0xc9   : > { %1160 = vmatprep.subr.bf16.mxu1 %v1132_v26 }
  0xca   : > { %1131 = vmatpush1.bf16.msra.mxu0 %v1130_v23 }
  0xcb   : > { %1133 = vmatprep.subr.bf16.mxu0 %v1132_v26 }
  0xcc   : > { %1176 = vmatpush1.bf16.msra.mxu1 %v1134_v46 }
  0xcd   : > { %1161 = vmatprep.subr.bf16.mxu1 %v1136_v47 }
  0xce   : > { %1135 = vmatpush1.bf16.msra.mxu0 %v1134_v46 }
  0xcf   : > { %1137 = vmatprep.subr.bf16.mxu0 %v1136_v47 }
  0xd0   : > { %1177 = vmatpush1.bf16.msra.mxu1 %v1138_v52 }
  0xd1   : > { %1162 = vmatprep.subr.bf16.mxu1 %v1140_v53 }
  0xd2   : > { %1139 = vmatpush1.bf16.msra.mxu0 %v1138_v52 }
  0xd3   : > { %1141 = vmatprep.subr.bf16.mxu0 %v1140_v53 }
  0xd4   : > { %1178 = vmatpush1.bf16.msra.mxu1 %v1142_v58 }
  0xd5   : > { %1163 = vmatprep.subr.bf16.mxu1 %v1144_v59 }
  0xd6   : > { %1143 = vmatpush1.bf16.msra.mxu0 %v1142_v58 }
  0xd7   : > { %1145 = vmatprep.subr.bf16.mxu0 %v1144_v59 }
  0xd8   : > { %1179 = vmatpush1.bf16.msra.mxu1 %v1146_v2 }
  0xda   : > { %1147 = vmatpush1.bf16.msra.mxu0 %v1146_v2 }
  0xdb   : > { %701 = vmatmul.mubr.f32.vlgmr.msra.gmra.mrb[4].mxu1 %v623_v6 }
  0xdd   : > { %695 = vmatmul.mubr.f32.vlgmr.msra.gmra.mrb[0].mxu0 %v618_v7 }
 0x16e   : > { %v450_v8 = vpop.f32.mrb[0].mxu1 }
 0x16f   : > { %v452_v9 = vpop.f32.mrb[1].mxu1 }
 0x172   : > { %v456_v10 = vpop.f32.mrb[2].mxu1 }
 0x173   : > { %v458_v38 = vpop.f32.mrb[3].mxu1 }
 0x174   : > { %v533_v11 = vpop.f32.mrb[2].mxu0 }
 0x175   : > { %v534_v12 = vadd.f32 %v533_v11, %v456_v10  ;;  %v535_v13 = vpop.f32.mrb[3].mxu0 }
 0x176   : > { %v536_v14 = vadd.f32 %v535_v13, %v458_v38 }
 0x1ae   : > { %v702_v15 = vpop.f32.mrb[4].mxu1 }
 0x1af   : > { %v709_v17 = vadd.f32 %v702_v15, %v534_v12  ;;  %v704_v18 = vpop.f32.mrb[5].mxu1 }
 0x1b0   : > { %v696_v16 = vpop.f32.mrb[0].mxu0  ;;  %v710_v21 = vadd.f32 %v704_v18, %v536_v14 }
 0x1b1   : > { %v1180_v19 = vadd.f32 %v696_v16, %v450_v8  ;;  %v698_v20 = vpop.f32.mrb[1].mxu0  ;;  %713 = vst [vmem:[%s207_s18 + $0x10] sm:$0xff] %v709_v17  ;;  %v750_v22 = vmul.f32 %v709_v17, %v709_v17 }
 0x1b2   : > { %v1181_v24 = vadd.f32 %v698_v20, %v452_v9  ;;  %714 = vst [vmem:[%s207_s18 + $0x18] sm:$0xff] %v710_v21  ;;  %v751_v30 = vmul.f32 %v710_v21, %v710_v21 }
 0x1b3   : > { %711 = vst [vmem:[%s207_s18] sm:$0xff] %v1180_v19  ;;  %v748_v25 = vmul.f32 %v1180_v19, %v1180_v19  ;;  %v715_v28 = vadd.f32 %v1180_v19, %v709_v17 }
 0x1b4   : > { %712 = vst [vmem:[%s207_s18 + $0x8] sm:$0xff] %v1181_v24  ;;  %v749_v31 = vmul.f32 %v1181_v24, %v1181_v24  ;;  %v722_v32 = vadd.f32 %v1181_v24, %v710_v21 }
 0x1b5   : > { %v716_v33 = vrot.slane %v715_v28, 4  ;;  %v752_v34 = vadd.f32 %v750_v22, %v748_v25 }
 0x1b6   : > { %1327 = shalt.err (!%p1324_p7)
}
 0x1b7   : > { %s1328_s29 = scalar_lea.hbm %s1656_s25, 512  ;;  %s1332_s7 = scalar_lea.hbm %s1738_s2, 1024 }
 0x1b8   : > { %p1329_p9 = scmp.ne.s32.totalorder %s1656_s25, %s1328_s29  ;;  %p1333_p5 = scmp.lt.u32.totalorder %s1656_s25, %s1738_s2 }
 0x1b9   : > { %p1334_p11 = scmp.lt.u32.totalorder %s1332_s7, %s1328_s29  ;;  %p1336_p4 = scmp.lt.u32.totalorder %s1328_s29, %s1656_s25 }
 0x1ba   : > { %p1330_p1 = pnand %p1329_p9, %p1542_p12 }
 0x1bb   : > { %p1335_p2 = por %p1334_p11, %p1333_p5 }
 0x1bc   : > { %p1331_p0 = pneg %p1330_p1 }
 0x1bd   : > { %p1337_p6 = por %p1336_p4, %p1335_p2 }
 0x1bf   : > { %p1338_p8 = pnand %p1337_p6, %p1331_p0 }
 0x1c1   : > { %1341 = shalt.err (!%p1338_p8)
}
 0x1c2   : > { %s1424_s18 = smov 256   ;;  %s1425_s8 = smov 16   ;;  %v723_v35 = vrot.slane %v722_v32, 4  ;;  %v759_v36 = vadd.f32 %v751_v30, %v749_v31  ;;  %v717_v37 = vadd.f32 %v716_v33, %v715_v28  ;;  %v753_v39 = vrot.slane %v752_v34, 4 }
 0x1c3   : > { %1194 = dma.vmem_to_hbm [thread:$0]  (%p1542_p12), %s1651_s20, 512, %s1656_s25, %s786_s5, %s1424_s18, %s1424_s18, %s1425_s8   ;;  %v1426_v41 = vmov 1966171168   ;;  %v736_v48 = vshrl.u32 %v219_v0, 7 }
 0x1c4   : > { %v724_v40 = vadd.f32 %v723_v35, %v722_v32  ;;  %v733_v42 = vunpack.c.l.s4 %v1426_v41  ;;  %v760_v43 = vrot.slane %v759_v36, 4  ;;  %v718_v23 = vrot.slane %v717_v37, 2  ;;  %s944_s20 = sshll.u32 %s1593_s6, 2  ;;  %s955_s9 = sshll.u32 %s1469_s16, 6 }
 0x1c5   : > { %v754_v26 = vadd.f32 %v753_v39, %v752_v34  ;;  %s214_s4 = scalar_lea.vmem [#allocation9], %s944_s20  ;;  %s1690_s27 = scalar_lea.hbm %s1739_s3, %s955_s9 }
 0x1c6   : > { %v725_v44 = vrot.slane %v724_v40, 2  ;;  %v761_v27 = vadd.f32 %v760_v43, %v759_v36  ;;  %v719_v29 = vadd.f32 %v718_v23, %v717_v37  ;;  %v734_v47 = vunpack.c.0.s8 %v733_v42  ;;  %s821_s25 = sshll.u32 %s214_s4, 4  ;;  %s791_s16 = scalar_lea.sflag [#allocation10], %s1593_s6  ;;  %s1692_s25 = int_to_ptr.vmem [resolvable:$true] %s821_s25 }
 0x1c7   : > { %v755_v45 = vrot.slane %v754_v26, 2  ;;  %s1342_s28 = scalar_lea.vmem %s1692_s25, 64  ;;  %s1427_s23 = smov [#allocation9]  }
 0x1c8   : > { %v726_v46 = vadd.f32 %v725_v44, %v724_v40  ;;  %v762_v49 = vrot.slane %v761_v27, 2  ;;  %v720_v50 = vrot.slane %v719_v29, 1  ;;  %v737_v57 = vsub.s32 %v734_v47, %v736_v48  ;;  %p1343_p10 = scmp.ne.s32.totalorder %s1692_s25, %s1342_s28  ;;  %s1346_s29 = sshll.u32 %s1427_s23, 4  ;;  %s1347_s29 = int_to_ptr.vmem [resolvable:$false] %s1346_s29 }
 0x1c9   : > { %v756_v51 = vadd.f32 %v755_v45, %v754_v26  ;;  %s1348_s30 = scalar_lea.vmem %s1347_s29, 128  ;;  %p1349_p7 = scmp.lt.s32.totalorder %s1692_s25, %s1347_s29 }
 0x1ca   : > { %v727_v52 = vrot.slane %v726_v46, 1  ;;  %v763_v53 = vadd.f32 %v762_v49, %v761_v27  ;;  %v721_v54 = vadd.f32 %v720_v50, %v719_v29  ;;  %p1344_p13 = pnand %p1343_p10, %p1542_p12  ;;  %p1350_p9 = scmp.lt.s32.totalorder %s1348_s30, %s1342_s28 }
 0x1cb   : > { %v757_v55 = vrot.slane %v756_v51, 1 }
 0x1cc   : > { %v728_v56 = vadd.f32 %v727_v52, %v726_v46  ;;  %v764_v58 = vrot.slane %v763_v53, 1  ;;  %p1345_p3 = pneg %p1344_p13  ;;  %p1351_p1 = por %p1350_p9, %p1349_p7 }
 0x1cd   : > { %v758_v59 = vadd.f32 %v757_v55, %v756_v51 }
 0x1ce   : > { %v731_v60 = vcombine.low %v721_v54, %v728_v56  ;;  %v765_v61 = vadd.f32 %v764_v58, %v763_v53  ;;  %p1352_p0 = pnand %p1351_p1, %p1345_p3 }
 0x1d0   : > { %v738_v62 = vrot.slane %v731_v60, %v737_v57  ;;  %v768_v63 = vcombine.low %v758_v59, %v765_v61 }
 0x1d2   : > { %v775_v0 = vrot.slane %v768_v63, %v737_v57  ;;  %v745_v2 = vrot.slane %v738_v62, %v737_v57 }
 0x1d4   : > { %747 = vst.msk [vmem:[%s214_s4] sm:$0x3] %vm1610_vm0, %v745_v2  ;;  %v782_v3 = vrot.slane %v775_v0, %v737_v57 }
 0x1d6   : > { %784 = vst.msk [vmem:[%s214_s4 + $0x2] sm:$0x3] %vm1610_vm0, %v782_v3 }
 0x1d7   : > { %1355 = shalt.err (!%p1352_p0)
}
 0x1d8   : > { %s1356_s6 = scalar_lea.hbm %s1690_s27, 64  ;;  %s1360_s10 = scalar_lea.hbm %s1739_s3, 128 }
 0x1d9   : > { %p1357_p5 = scmp.ne.s32.totalorder %s1690_s27, %s1356_s6  ;;  %p1361_p4 = scmp.lt.u32.totalorder %s1690_s27, %s1739_s3 }
 0x1da   : > { %p1362_p6 = scmp.lt.u32.totalorder %s1360_s10, %s1356_s6  ;;  %p1364_p10 = scmp.lt.u32.totalorder %s1356_s6, %s1690_s27 }
 0x1db   : > { %p1358_p11 = pnand %p1357_p5, %p1542_p12 }
 0x1dc   : > { %p1363_p8 = por %p1362_p6, %p1361_p4 }
 0x1dd   : > { %p1359_p2 = pneg %p1358_p11 }
 0x1de   : > { %p1365_p13 = por %p1364_p10, %p1363_p8 }
 0x1e0   : > { %p1366_p3 = pnand %p1365_p13, %p1359_p2 }
 0x1e2   : > { %1369 = shalt.err (!%p1366_p3)
}
 0x1e3   : > { %1195 = dma.vmem_to_hbm [thread:$0]  (%p1542_p12), %s1692_s25, 64, %s1690_s27, %s791_s16  }
 0x1e4 PF: > { %s833_s8 = sand.u32 1, %s1404_s12   ;;  %p1756_p7 = scmp.ne.s32.totalorder %s1744_s19, 0 }
 0x1e5   : > { %p1757_p9 = scmp.ge.s32.totalorder %s1416_s15, 2  ;;  %s834_s20 = scalar_lea.sflag [#allocation5], %s833_s8 }
 0x1e7   : > { %p1207_p1 = pnand %p1757_p9, %p1756_p7 }
 0x1e9   : > { %1395 = dma.done.wait (!%p1207_p1), %s834_s20, 512  }
 0x1ea   : > { %1397 = vsyncadd (!%p1207_p1), %s834_s20, 4294966784  ;;  %s843_s9 = scalar_lea.sflag [#allocation10], %s833_s8 }
 0x1eb   : > { %1399 = dma.done.wait (!%p1207_p1), %s843_s9, 64  }
 0x1ec   : > { %1401 = vsyncadd (!%p1207_p1), %s843_s9, 4294967232  ;;  %p21_p12 = scmp.ge.s32.totalorder %s1504_s24, 4   ;;  %s1758_s12 = smov %s1408_s13 }
 0x1ed   : > { %s1759_s13 = smov %s1412_s14  ;;  %s1760_s14 = smov %s1538_s17 }
 0x1ee   : > { %s1761_s15 = smov %s1504_s24  ;;  %23 = sbr.rel (!%p21_p12) target bundleno = 8 (0x8), region = 97 }
 0x1f5   :  { %848 = vsyncpa [#allocation4], 1 }
 0x1f6   :  { %850 = vsyncpa [#allocation4 + $0x1], 1 }
 0x1f7   :  { %851 = vsyncpa [#allocation7], 1 }
 0x1f8   :  { %852 = vsyncpa [#allocation5], 1 }
 0x1f9   :  { %854 = vsyncpa [#allocation5 + $0x1], 1 }
 0x1fa   :  { %855 = vsyncpa [#allocation10], 1 }
 0x1fb   :  { %857 = vsyncpa [#allocation10 + $0x1], 1 }

</bundles_post_ra>
